<compile_context>
chip_gen: v7x
topology: tpu7x:2x2x1
jax: 0.10.0
libtpu: 0.0.40
codegen_flags: <defaults>
</compile_context>

<pallas_src>
import jax
import jax.numpy as jnp
from jax.experimental import pallas as pl
from jax.experimental.pallas import tpu as pltpu


def _fused_conv1x1_kernel(x0_ref, w0_ref, x1_ref, w1_ref, o0_ref, o1_ref):
    """Both 1x1 convs as single lane-dense matmuls.

    x0_ref: (C0_in, N*HW0) f32    w0_ref: (C0_out, C0_in) bf16
    x1_ref: (C1_in, N*HW1) f32    w1_ref: (C1_out, C1_in) bf16
    o0_ref: (C0_out, N*HW0) f32   o1_ref: (C1_out, N*HW1) f32
    """
    # Cast inside the kernel: VPU cost rides under the MXU / DMA.
    x0 = x0_ref[...].astype(jnp.bfloat16)
    o0_ref[...] = jnp.dot(
        w0_ref[...], x0, preferred_element_type=jnp.float32
    ).astype(o0_ref.dtype)

    x1 = x1_ref[...].astype(jnp.bfloat16)
    o1_ref[...] = jnp.dot(
        w1_ref[...], x1, preferred_element_type=jnp.float32
    ).astype(o1_ref.dtype)


def _fused_conv1x1_pair(x0_nchw, w0_oi, x1_nchw, w1_oi):
    """Fused pair of bias-free 1x1 convs on NCHW activations.

    x0_nchw: (N, C0_in, H0, W0)   w0_oi: (C0_out, C0_in) bf16
    x1_nchw: (N, C1_in, H1, W1)   w1_oi: (C1_out, C1_in) bf16
    Returns ((N, C0_out, H0, W0), (N, C1_out, H1, W1)) in the activation dtype.
    """
    n, c0, h0, s0 = x0_nchw.shape
    n1, c1, h1, s1 = x1_nchw.shape
    # The original module always feeds same-batch feature maps to both convs.
    assert n == n1, "fused path assumes both inputs share the batch dimension"
    nhw0, nhw1 = n * h0 * s0, n * h1 * s1
    co0, co1 = w0_oi.shape[0], w1_oi.shape[0]

    # Fold batch into the lane axis: (N, C, H, W) -> (C, N*H*W).
    x0_cm = jnp.transpose(x0_nchw, (1, 0, 2, 3)).reshape(c0, nhw0)
    x1_cm = jnp.transpose(x1_nchw, (1, 0, 2, 3)).reshape(c1, nhw1)

    out_dtype = x0_nchw.dtype
    out_isz = jnp.dtype(out_dtype).itemsize
    flops = 2 * (co0 * c0 * nhw0 + co1 * c1 * nhw1)
    # Single grid point: every array is touched exactly once.
    bytes_accessed = (
        c0 * nhw0 * x0_nchw.dtype.itemsize
        + co0 * c0 * w0_oi.dtype.itemsize
        + c1 * nhw1 * x1_nchw.dtype.itemsize
        + co1 * c1 * w1_oi.dtype.itemsize
        + co0 * nhw0 * out_isz
        + co1 * nhw1 * out_isz
    )

    vmem = pltpu.MemorySpace.VMEM
    y0, y1 = pl.pallas_call(
        _fused_conv1x1_kernel,
        out_shape=(
            jax.ShapeDtypeStruct((co0, nhw0), out_dtype),
            jax.ShapeDtypeStruct((co1, nhw1), out_dtype),
        ),
        # Single grid point: whole-array VMEM blocks, no pipelining needed.
        in_specs=[
            pl.BlockSpec(memory_space=vmem),   # x0 (512, 128)
            pl.BlockSpec(memory_space=vmem),   # w0 (512, 512) bf16
            pl.BlockSpec(memory_space=vmem),   # x1 (64, 128)
            pl.BlockSpec(memory_space=vmem),   # w1 (64, 64) bf16
        ],
        out_specs=(
            pl.BlockSpec(memory_space=vmem),
            pl.BlockSpec(memory_space=vmem),
        ),
        cost_estimate=pl.CostEstimate(
            flops=flops, transcendentals=0, bytes_accessed=bytes_accessed),
    )(x0_cm, w0_oi, x1_cm, w1_oi)

    # (Cout, N*H*W) -> (N, Cout, H, W)
    y0 = jnp.transpose(y0.reshape(co0, n, h0, s0), (1, 0, 2, 3))
    y1 = jnp.transpose(y1.reshape(co1, n, h1, s1), (1, 0, 2, 3))
    return y0, y1


@jax.jit
def _transformer_forward(x0, x1, w0, w1):
    return _fused_conv1x1_pair(x0, w0, x1, w1)


class Transformer:
    """Pallas port of model_mtan_kdmtl_2tasks.transformer (two bias-free 1x1 convs)."""

    def __init__(self, key):
        k1, k2 = jax.random.split(key)
        # PyTorch param shapes are (512,512,1,1) / (64,64,1,1); stored here
        # pre-squeezed to (Cout, Cin) and pre-cast to bf16 ONCE (not per call).
        self.conv1_w = (jax.random.normal(k1, (512, 512), jnp.float32)
                        * (1.0 / jnp.sqrt(512.0))).astype(jnp.bfloat16)
        self.conv2_w = (jax.random.normal(k2, (64, 64), jnp.float32)
                        * (1.0 / jnp.sqrt(64.0))).astype(jnp.bfloat16)

    def __call__(self, inputs):
        y0, y1 = _transformer_forward(inputs[0], inputs[1],
                                      self.conv1_w, self.conv2_w)
        return [y0, y1]


if __name__ == "__main__":
    key = jax.random.PRNGKey(0)
    kp, kx0, kx1 = jax.random.split(key, 3)

    model = Transformer(kp)

    # Small shapes consistent with the module's channel counts (512 and 64).
    # N*H*W = 2*8*8 = 128 -> lane-dense blocks everywhere.
    x0 = jax.random.normal(kx0, (2, 512, 8, 8), jnp.float32)   # NCHW
    x1 = jax.random.normal(kx1, (2, 64, 8, 8), jnp.float32)    # NCHW

    outs = model([x0, x1])
    outs = [jax.block_until_ready(o) for o in outs]

    # Reference: full-precision 1x1 conv (einsum over channels) in f32.
    w0_f32 = model.conv1_w.astype(jnp.float32)
    w1_f32 = model.conv2_w.astype(jnp.float32)
    ref0 = jnp.einsum("oc,nchw->nohw", w0_f32, x0)
    ref1 = jnp.einsum("oc,nchw->nohw", w1_f32, x1)

    assert outs[0].shape == (2, 512, 8, 8) and outs[1].shape == (2, 64, 8, 8)
    # Activations are rounded to bf16 inside the kernel (f32 accumulation),
    # so compare against the f32 reference with a bf16-appropriate tolerance.
    assert jnp.allclose(outs[0], ref0, atol=5e-2, rtol=5e-2)
    assert jnp.allclose(outs[1], ref1, atol=5e-2, rtol=5e-2)

    print("KERNEL_OK")
</pallas_src>

<mosaic_0001>
module attributes {stable_mosaic.version = 11 : i64} {
  func.func @_fused_conv1x1_kernel(%arg0: memref<512x128xf32, #tpu.memory_space<vmem>>, %arg1: memref<512x512xbf16, #tpu.memory_space<vmem>>, %arg2: memref<64x128xf32, #tpu.memory_space<vmem>>, %arg3: memref<64x64xbf16, #tpu.memory_space<vmem>>, %arg4: memref<512x128xf32, #tpu.memory_space<vmem>>, %arg5: memref<64x128xf32, #tpu.memory_space<vmem>>) attributes {dimension_semantics = [], scalar_prefetch = 0 : i64, scratch_operands = 0 : i64, tpu.core_type = #tpu.core_type<tc>} {
    %c0 = arith.constant 0 : index
    %c0_0 = arith.constant 0 : index
    %0 = vector.load %arg0[%c0, %c0_0] : memref<512x128xf32, #tpu.memory_space<vmem>>, vector<512x128xf32>
    %1 = arith.truncf %0 : vector<512x128xf32> to vector<512x128xbf16>
    %c0_1 = arith.constant 0 : index
    %c0_2 = arith.constant 0 : index
    %2 = vector.load %arg1[%c0_1, %c0_2] : memref<512x512xbf16, #tpu.memory_space<vmem>>, vector<512x512xbf16>
    %cst = arith.constant dense<0.000000e+00> : vector<512x128xf32>
    %3 = tpu.matmul %2, %1, %cst {dimension_numbers = #tpu.dot_dimension_numbers<[1], [0], [0], [1], [0, 0, 1, 1], [], []>} : vector<512x512xbf16>, vector<512x128xbf16>, vector<512x128xf32> -> vector<512x128xf32>
    %c0_3 = arith.constant 0 : index
    %c0_4 = arith.constant 0 : index
    %4 = vector.load %arg4[%c0_3, %c0_4] : memref<512x128xf32, #tpu.memory_space<vmem>>, vector<512x128xf32>
    tpu.vector_store %arg4[%c0_3, %c0_4], %3 {strides = array<i32>} : memref<512x128xf32, #tpu.memory_space<vmem>>, vector<512x128xf32>,
    %c0_5 = arith.constant 0 : index
    %c0_6 = arith.constant 0 : index
    %5 = vector.load %arg2[%c0_5, %c0_6] : memref<64x128xf32, #tpu.memory_space<vmem>>, vector<64x128xf32>
    %6 = arith.truncf %5 : vector<64x128xf32> to vector<64x128xbf16>
    %c0_7 = arith.constant 0 : index
    %c0_8 = arith.constant 0 : index
    %7 = vector.load %arg3[%c0_7, %c0_8] : memref<64x64xbf16, #tpu.memory_space<vmem>>, vector<64x64xbf16>
    %cst_9 = arith.constant dense<0.000000e+00> : vector<64x128xf32>
    %8 = tpu.matmul %7, %6, %cst_9 {dimension_numbers = #tpu.dot_dimension_numbers<[1], [0], [0], [1], [0, 0, 1, 1], [], []>} : vector<64x64xbf16>, vector<64x128xbf16>, vector<64x128xf32> -> vector<64x128xf32>
    %c0_10 = arith.constant 0 : index
    %c0_11 = arith.constant 0 : index
    %9 = vector.load %arg5[%c0_10, %c0_11] : memref<64x128xf32, #tpu.memory_space<vmem>>, vector<64x128xf32>
    tpu.vector_store %arg5[%c0_10, %c0_11], %8 {strides = array<i32>} : memref<64x128xf32, #tpu.memory_space<vmem>>, vector<64x128xf32>,
    return
  }
}

</mosaic_0001>

<bundles_post_ra>
// kernel: _transformer_forward.1
= control target key start
LH: loop header
LB: loop body
LE: loop exit
PB: predicated region body
PF: predicated region fallthrough
CT: control target
= control target key end

     0   :  { %v2115_v0 = vmov 0   ;;  %vm1566_vm0 = vcmask 523264   ;;  %s3090_s0 = inlined_call_operand.vmem [shape: f32[512,128], index: 0, kind: input, shape index: {}]   ;;  %s3091_s1 = inlined_call_operand.vmem [shape: bf16[512,512], index: 1, kind: input, shape index: {}]   ;;  %s3092_s2 = inlined_call_operand.vmem [shape: f32[64,128], index: 2, kind: input, shape index: {}]   ;;  %s3093_s3 = inlined_call_operand.vmem [shape: bf16[64,64], index: 3, kind: input, shape index: {}]   ;;  %s3094_s4 = inlined_call_operand.vmem [shape: f32[512,128], index: 4, kind: output, shape index: {0}]   ;;  %s3095_s5 = inlined_call_operand.vmem [shape: f32[64,128], index: 5, kind: output, shape index: {1}]  }
   0x1   :  { %884 = vmatprep.subr.bf16.mxu0 %v2115_v0  ;;  %1820 = vmatprep.subr.bf16.mxu1 %v2115_v0  ;;  %v20_v1 = vld [vmem:[%s3090_s0] sm:$0xff]  ;;  %v21_v2 = vld [vmem:[%s3090_s0 + $0x8] sm:$0xff]  ;;  %v22_v6 = vld [vmem:[%s3090_s0 + $0x10] sm:$0xff] }
   0x2   :  { %v52_v3 = vld [vmem:[%s3090_s0 + $0x100] sm:$0xff]  ;;  %v84_v4 = vpack.c.bf16 %v21_v2, %v20_v1  ;;  %v53_v5 = vld [vmem:[%s3090_s0 + $0x108] sm:$0xff]  ;;  %v23_v7 = vld [vmem:[%s3090_s0 + $0x18] sm:$0xff] }
   0x3   :  { %v2166_v8 = vpack.c.bf16 %v53_v5, %v52_v3  ;;  %v54_v9 = vld [vmem:[%s3090_s0 + $0x110] sm:$0xff]  ;;  %v55_v10 = vld [vmem:[%s3090_s0 + $0x118] sm:$0xff]  ;;  %v85_v11 = vpack.c.bf16 %v23_v7, %v22_v6  ;;  %v24_v13 = vld [vmem:[%s3090_s0 + $0x20] sm:$0xff] }
   0x4   :  { %885 = vmatpush1.bf16.msra.mxu0 %v84_v4  ;;  %v2176_v12 = vpack.c.bf16 %v55_v10, %v54_v9  ;;  %v25_v14 = vld [vmem:[%s3090_s0 + $0x28] sm:$0xff]  ;;  %v56_v15 = vld [vmem:[%s3090_s0 + $0x120] sm:$0xff]  ;;  %v26_v19 = vld [vmem:[%s3090_s0 + $0x30] sm:$0xff] }
   0x5   :  { %1836 = vmatpush1.bf16.msra.mxu1 %v2166_v8  ;;  %886 = vmatprep.subr.bf16.mxu0 %v2115_v0  ;;  %v57_v16 = vld [vmem:[%s3090_s0 + $0x128] sm:$0xff]  ;;  %v86_v17 = vpack.c.bf16 %v25_v14, %v24_v13  ;;  %v27_v20 = vld [vmem:[%s3090_s0 + $0x38] sm:$0xff]  ;;  %v58_v21 = vld [vmem:[%s3090_s0 + $0x130] sm:$0xff] }
   0x6   :  { %1821 = vmatprep.subr.bf16.mxu1 %v2115_v0  ;;  %v2193_v18 = vpack.c.bf16 %v57_v16, %v56_v15  ;;  %v59_v22 = vld [vmem:[%s3090_s0 + $0x138] sm:$0xff]  ;;  %v87_v23 = vpack.c.bf16 %v27_v20, %v26_v19  ;;  %v28_v25 = vld [vmem:[%s3090_s0 + $0x40] sm:$0xff]  ;;  %v29_v26 = vld [vmem:[%s3090_s0 + $0x48] sm:$0xff] }
   0x7   :  { %v2210_v24 = vpack.c.bf16 %v59_v22, %v58_v21  ;;  %v60_v27 = vld [vmem:[%s3090_s0 + $0x140] sm:$0xff]  ;;  %v61_v28 = vld [vmem:[%s3090_s0 + $0x148] sm:$0xff]  ;;  %v88_v29 = vpack.c.bf16 %v29_v26, %v28_v25  ;;  %v30_v31 = vld [vmem:[%s3090_s0 + $0x50] sm:$0xff] }
   0x8   :  { %887 = vmatpush1.bf16.msra.mxu0 %v85_v11  ;;  %v2227_v30 = vpack.c.bf16 %v61_v28, %v60_v27  ;;  %v31_v32 = vld [vmem:[%s3090_s0 + $0x58] sm:$0xff]  ;;  %v62_v33 = vld [vmem:[%s3090_s0 + $0x150] sm:$0xff]  ;;  %v32_v37 = vld [vmem:[%s3090_s0 + $0x60] sm:$0xff] }
   0x9   :  { %1837 = vmatpush1.bf16.msra.mxu1 %v2176_v12  ;;  %888 = vmatprep.subr.bf16.mxu0 %v2115_v0  ;;  %v63_v34 = vld [vmem:[%s3090_s0 + $0x158] sm:$0xff]  ;;  %v89_v35 = vpack.c.bf16 %v31_v32, %v30_v31  ;;  %v33_v38 = vld [vmem:[%s3090_s0 + $0x68] sm:$0xff]  ;;  %v64_v39 = vld [vmem:[%s3090_s0 + $0x160] sm:$0xff] }
   0xa   :  { %1822 = vmatprep.subr.bf16.mxu1 %v2115_v0  ;;  %v2244_v36 = vpack.c.bf16 %v63_v34, %v62_v33  ;;  %v65_v40 = vld [vmem:[%s3090_s0 + $0x168] sm:$0xff]  ;;  %v1921_v41 = vld [vmem:[%s3091_s1 + $0x4] ss:$16 sps:$4 sm:$0xff]   ;;  %v90_v42 = vpack.c.bf16 %v33_v38, %v32_v37  ;;  %v35_v46 = vld [vmem:[%s3090_s0 + $0x78] sm:$0xff] }
   0xb   :  { %v34_v43 = vld [vmem:[%s3090_s0 + $0x70] sm:$0xff]  ;;  %v1924_v44 = vld [vmem:[%s3091_s1 + $0x2c] ss:$16 sps:$4 sm:$0xff]   ;;  %v2270_v45 = vpack.c.bf16 %v65_v40, %v64_v39  ;;  %916 = vmatprep.mubr.bf16.mxu0 %v1921_v41  ;;  %v36_v50 = vld [vmem:[%s3090_s0 + $0x80] sm:$0xff] }
   0xc   :  { %889 = vmatpush1.bf16.msra.mxu0 %v86_v17  ;;  %v66_v47 = vld [vmem:[%s3090_s0 + $0x170] sm:$0xff]  ;;  %v67_v48 = vld [vmem:[%s3090_s0 + $0x178] sm:$0xff]  ;;  %1213 = vmatprep.mubr.bf16.mxu1 %v1924_v44  ;;  %v91_v49 = vpack.c.bf16 %v35_v46, %v34_v43  ;;  %v37_v52 = vld [vmem:[%s3090_s0 + $0x88] sm:$0xff] }
   0xd   :  { %1838 = vmatpush1.bf16.msra.mxu1 %v2193_v18  ;;  %890 = vmatprep.subr.bf16.mxu0 %v2115_v0  ;;  %v2287_v51 = vpack.c.bf16 %v67_v48, %v66_v47  ;;  %v68_v53 = vld [vmem:[%s3090_s0 + $0x180] sm:$0xff]  ;;  %v69_v54 = vld [vmem:[%s3090_s0 + $0x188] sm:$0xff]  ;;  %v92_v55 = vpack.c.bf16 %v37_v52, %v36_v50  ;;  %v38_v56 = vld [vmem:[%s3090_s0 + $0x90] sm:$0xff] }
   0xe   :  { %1823 = vmatprep.subr.bf16.mxu1 %v2115_v0  ;;  %v2304_v57 = vpack.c.bf16 %v69_v54, %v68_v53  ;;  %v39_v58 = vld [vmem:[%s3090_s0 + $0x98] sm:$0xff]  ;;  %v70_v59 = vld [vmem:[%s3090_s0 + $0x190] sm:$0xff]  ;;  %v40_v62 = vld [vmem:[%s3090_s0 + $0xa0] sm:$0xff] }
   0xf   :  { %v71_v60 = vld [vmem:[%s3090_s0 + $0x198] sm:$0xff]  ;;  %v93_v61 = vpack.c.bf16 %v39_v58, %v38_v56  ;;  %v41_v1 = vld [vmem:[%s3090_s0 + $0xa8] sm:$0xff]  ;;  %v72_v2 = vld [vmem:[%s3090_s0 + $0x1a0] sm:$0xff] }
  0x10   :  { %891 = vmatpush1.bf16.msra.mxu0 %v87_v23  ;;  %v2321_v63 = vpack.c.bf16 %v71_v60, %v70_v59  ;;  %v73_v3 = vld [vmem:[%s3090_s0 + $0x1a8] sm:$0xff]  ;;  %v94_v4 = vpack.c.bf16 %v41_v1, %v40_v62  ;;  %v42_v5 = vld [vmem:[%s3090_s0 + $0xb0] sm:$0xff]  ;;  %v43_v7 = vld [vmem:[%s3090_s0 + $0xb8] sm:$0xff] }
  0x11   :  { %1839 = vmatpush1.bf16.msra.mxu1 %v2210_v24  ;;  %892 = vmatprep.subr.bf16.mxu0 %v2115_v0  ;;  %v2338_v6 = vpack.c.bf16 %v73_v3, %v72_v2  ;;  %v74_v9 = vld [vmem:[%s3090_s0 + $0x1b0] sm:$0xff]  ;;  %v75_v10 = vld [vmem:[%s3090_s0 + $0x1b8] sm:$0xff]  ;;  %v95_v11 = vpack.c.bf16 %v43_v7, %v42_v5  ;;  %v44_v13 = vld [vmem:[%s3090_s0 + $0xc0] sm:$0xff] }
  0x12   :  { %1824 = vmatprep.subr.bf16.mxu1 %v2115_v0  ;;  %v45_v14 = vld [vmem:[%s3090_s0 + $0xc8] sm:$0xff]  ;;  %v2358_v15 = vpack.c.bf16 %v75_v10, %v74_v9  ;;  %v76_v16 = vld [vmem:[%s3090_s0 + $0x1c0] sm:$0xff]  ;;  %v46_v20 = vld [vmem:[%s3090_s0 + $0xd0] sm:$0xff] }
  0x13   :  { %v77_v17 = vld [vmem:[%s3090_s0 + $0x1c8] sm:$0xff]  ;;  %v96_v19 = vpack.c.bf16 %v45_v14, %v44_v13  ;;  %v47_v22 = vld [vmem:[%s3090_s0 + $0xd8] sm:$0xff]  ;;  %v78_v23 = vld [vmem:[%s3090_s0 + $0x1d0] sm:$0xff] }
  0x14   :  { %893 = vmatpush1.bf16.msra.mxu0 %v88_v29  ;;  %v2372_v21 = vpack.c.bf16 %v77_v17, %v76_v16  ;;  %v79_v25 = vld [vmem:[%s3090_s0 + $0x1d8] sm:$0xff]  ;;  %v97_v26 = vpack.c.bf16 %v47_v22, %v46_v20  ;;  %v48_v27 = vld [vmem:[%s3090_s0 + $0xe0] sm:$0xff]  ;;  %v49_v28 = vld [vmem:[%s3090_s0 + $0xe8] sm:$0xff] }
  0x15   :  { %1840 = vmatpush1.bf16.msra.mxu1 %v2227_v30  ;;  %894 = vmatprep.subr.bf16.mxu0 %v2115_v0  ;;  %v2392_v29 = vpack.c.bf16 %v79_v25, %v78_v23  ;;  %v80_v31 = vld [vmem:[%s3090_s0 + $0x1e0] sm:$0xff]  ;;  %v81_v32 = vld [vmem:[%s3090_s0 + $0x1e8] sm:$0xff]  ;;  %v50_v33 = vld [vmem:[%s3090_s0 + $0xf0] sm:$0xff]  ;;  %v98_v34 = vpack.c.bf16 %v49_v28, %v48_v27 }
  0x16   :  { %1825 = vmatprep.subr.bf16.mxu1 %v2115_v0  ;;  %v2409_v37 = vpack.c.bf16 %v81_v32, %v80_v31  ;;  %v82_v38 = vld [vmem:[%s3090_s0 + $0x1f0] sm:$0xff]  ;;  %v83_v39 = vld [vmem:[%s3090_s0 + $0x1f8] sm:$0xff]  ;;  %v1526_v40 = vld [vmem:[%s3092_s2] sm:$0xff] }
  0x17   :  { %v1527_v41 = vld [vmem:[%s3092_s2 + $0x8] sm:$0xff]  ;;  %v2426_v43 = vpack.c.bf16 %v83_v39, %v82_v38  ;;  %v1919_v44 = vld [vmem:[%s3091_s1] ss:$16 sps:$4 sm:$0xff]   ;;  %v1925_v50 = vld [vmem:[%s3091_s1 + $0x24] ss:$16 sps:$4 sm:$0xff]  }
  0x18   :  { %895 = vmatpush1.bf16.msra.mxu0 %v89_v35  ;;  %v51_v35 = vld [vmem:[%s3090_s0 + $0xf8] sm:$0xff]  ;;  %v1534_v46 = vpack.c.bf16 %v1527_v41, %v1526_v40  ;;  %v1528_v48 = vld [vmem:[%s3092_s2 + $0x10] sm:$0xff]  ;;  %v1530_v53 = vld [vmem:[%s3092_s2 + $0x20] sm:$0xff] }
  0x19   :  { %1841 = vmatpush1.bf16.msra.mxu1 %v2244_v36  ;;  %896 = vmatprep.subr.bf16.mxu0 %v2115_v0  ;;  %v1922_v47 = vld [vmem:[%s3091_s1 + $0x28] ss:$16 sps:$4 sm:$0xff]   ;;  %v1927_v52 = vld [vmem:[%s3091_s1 + $0x4c] ss:$16 sps:$4 sm:$0xff]   ;;  %v1929_v56 = vld [vmem:[%s3091_s1 + $0x20] ss:$16 sps:$4 sm:$0xff]  }
  0x1a   :  { %1826 = vmatprep.subr.bf16.mxu1 %v2115_v0  ;;  %v1930_v58 = vld [vmem:[%s3091_s1 + $0x48] ss:$16 sps:$4 sm:$0xff]   ;;  %v1931_v60 = vld [vmem:[%s3091_s1 + $0x44] ss:$16 sps:$4 sm:$0xff]   ;;  %v1939_v1 = vld [vmem:[%s3091_s1 + $0x8c] ss:$16 sps:$4 sm:$0xff]  }
  0x1b   :  { %v1936_v62 = vld [vmem:[%s3091_s1 + $0x68] ss:$16 sps:$4 sm:$0xff]   ;;  %v1945_v3 = vld [vmem:[%s3091_s1 + $0xac] ss:$16 sps:$4 sm:$0xff]   ;;  %v1967_v14 = vld [vmem:[%s3091_s1 + $0x104] ss:$16 sps:$4 sm:$0xff]  }
  0x1c   :  { %897 = vmatpush1.bf16.msra.mxu0 %v90_v42  ;;  %v99_v42 = vpack.c.bf16 %v51_v35, %v50_v33  ;;  %v1942_v2 = vld [vmem:[%s3091_s1 + $0x88] ss:$16 sps:$4 sm:$0xff]   ;;  %v1951_v5 = vld [vmem:[%s3091_s1 + $0xcc] ss:$16 sps:$4 sm:$0xff]   ;;  %v1532_v16 = vld [vmem:[%s3092_s2 + $0x30] sm:$0xff] }
  0x1d   :  { %1842 = vmatpush1.bf16.msra.mxu1 %v2270_v45  ;;  %898 = vmatprep.subr.bf16.mxu0 %v2115_v0  ;;  %v1954_v7 = vld [vmem:[%s3091_s1 + $0xc8] ss:$16 sps:$4 sm:$0xff]   ;;  %v1957_v9 = vld [vmem:[%s3091_s1 + $0xec] ss:$16 sps:$4 sm:$0xff]   ;;  %v1971_v20 = vld [vmem:[%s3091_s1 + $0x100] ss:$16 sps:$4 sm:$0xff]  }
  0x1e   :  { %1827 = vmatprep.subr.bf16.mxu1 %v2115_v0  ;;  %v1960_v10 = vld [vmem:[%s3091_s1 + $0xe8] ss:$16 sps:$4 sm:$0xff]   ;;  %v1973_v22 = vld [vmem:[%s3091_s1 + $0x124] ss:$16 sps:$4 sm:$0xff]   ;;  %v1975_v23 = vld [vmem:[%s3091_s1 + $0x14c] ss:$16 sps:$4 sm:$0xff]  }
  0x1f   :  { %v1966_v13 = vld [vmem:[%s3091_s1 + $0x108] ss:$16 sps:$4 sm:$0xff]   ;;  %v1981_v27 = vld [vmem:[%s3091_s1 + $0x16c] ss:$16 sps:$4 sm:$0xff]   ;;  %v1983_v28 = vld [vmem:[%s3091_s1 + $0x140] ss:$16 sps:$4 sm:$0xff]  }
  0x20   :  { %899 = vmatpush1.bf16.msra.mxu0 %v91_v49  ;;  %v1529_v49 = vld [vmem:[%s3092_s2 + $0x18] sm:$0xff]  ;;  %v1985_v31 = vld [vmem:[%s3091_s1 + $0x164] ss:$16 sps:$4 sm:$0xff]   ;;  %v1989_v33 = vld [vmem:[%s3091_s1 + $0x160] ss:$16 sps:$4 sm:$0xff]  }
  0x21   :  { %1843 = vmatpush1.bf16.msra.mxu1 %v2287_v51  ;;  %900 = vmatprep.subr.bf16.mxu0 %v2115_v0  ;;  %v1535_v54 = vpack.c.bf16 %v1529_v49, %v1528_v48  ;;  %v1533_v17 = vld [vmem:[%s3092_s2 + $0x38] sm:$0xff]  ;;  %v1991_v35 = vld [vmem:[%s3091_s1 + $0x184] ss:$16 sps:$4 sm:$0xff]   ;;  %v1995_v38 = vld [vmem:[%s3091_s1 + $0x180] ss:$16 sps:$4 sm:$0xff]  }
  0x22   :  { %1828 = vmatprep.subr.bf16.mxu1 %v2115_v0  ;;  %v1978_v25 = vld [vmem:[%s3091_s1 + $0x148] ss:$16 sps:$4 sm:$0xff]   ;;  %v1987_v32 = vld [vmem:[%s3091_s1 + $0x18c] ss:$16 sps:$4 sm:$0xff]   ;;  %v1997_v40 = vld [vmem:[%s3091_s1 + $0x1a4] ss:$16 sps:$4 sm:$0xff]  }
  0x23   :  { %v1996_v39 = vld [vmem:[%s3091_s1 + $0x1a8] ss:$16 sps:$4 sm:$0xff]   ;;  %v1999_v41 = vld [vmem:[%s3091_s1 + $0x1cc] ss:$16 sps:$4 sm:$0xff]   ;;  %v2009_v49 = vld [vmem:[%s3091_s1 + $0x1e4] ss:$16 sps:$4 sm:$0xff]  }
  0x24   :  { %901 = vmatpush1.bf16.msra.mxu0 %v92_v55  ;;  %v1531_v55 = vld [vmem:[%s3092_s2 + $0x28] sm:$0xff] }
  0x25   :  { %1844 = vmatpush1.bf16.msra.mxu1 %v2304_v57  ;;  %902 = vmatprep.subr.bf16.mxu0 %v2115_v0  ;;  %v1536_v59 = vpack.c.bf16 %v1531_v55, %v1530_v53  ;;  %v2008_v48 = vld [vmem:[%s3091_s1 + $0x1e8] ss:$16 sps:$4 sm:$0xff]   ;;  %v2017_v55 = vld [vmem:[%s3091_s1 + $0x22c] ss:$16 sps:$4 sm:$0xff]  }
  0x26   :  { %1829 = vmatprep.subr.bf16.mxu1 %v2115_v0  ;;  %v2014_v53 = vld [vmem:[%s3091_s1 + $0x208] ss:$16 sps:$4 sm:$0xff]  }
  0x28   :  { %903 = vmatpush1.bf16.msra.mxu0 %v93_v61  ;;  %v1935_v61 = vld [vmem:[%s3091_s1 + $0x40] ss:$16 sps:$4 sm:$0xff]  }
  0x29   :  { %1845 = vmatpush1.bf16.msra.mxu1 %v2321_v63  ;;  %904 = vmatprep.subr.bf16.mxu0 %v2115_v0 }
  0x2a   :  { %1830 = vmatprep.subr.bf16.mxu1 %v2115_v0 }
  0x2c   :  { %905 = vmatpush1.bf16.msra.mxu0 %v94_v4  ;;  %v1948_v4 = vld [vmem:[%s3091_s1 + $0xa8] ss:$16 sps:$4 sm:$0xff]  }
  0x2d   :  { %1846 = vmatpush1.bf16.msra.mxu1 %v2338_v6  ;;  %906 = vmatprep.subr.bf16.mxu0 %v2115_v0 }
  0x2e   :  { %1831 = vmatprep.subr.bf16.mxu1 %v2115_v0 }
  0x30   :  { %907 = vmatpush1.bf16.msra.mxu0 %v95_v11  ;;  %v1963_v11 = vld [vmem:[%s3091_s1 + $0x10c] ss:$16 sps:$4 sm:$0xff]  }
  0x31   :  { %1847 = vmatpush1.bf16.msra.mxu1 %v2358_v15  ;;  %908 = vmatprep.subr.bf16.mxu0 %v2115_v0 }
  0x32   :  { %1832 = vmatprep.subr.bf16.mxu1 %v2115_v0 }
  0x34   :  { %909 = vmatpush1.bf16.msra.mxu0 %v96_v19  ;;  %v1537_v19 = vpack.c.bf16 %v1533_v17, %v1532_v16  ;;  %v2062_v16 = vld [vmem:[%s3091_s1 + $0x308] ss:$16 sps:$4 sm:$0xff]   ;;  %v2063_v17 = vld [vmem:[%s3091_s1 + $0x304] ss:$16 sps:$4 sm:$0xff]  }
  0x35   :  { %1848 = vmatpush1.bf16.msra.mxu1 %v2372_v21  ;;  %910 = vmatprep.subr.bf16.mxu0 %v2115_v0 }
  0x36   :  { %1833 = vmatprep.subr.bf16.mxu1 %v2115_v0 }
  0x38   :  { %911 = vmatpush1.bf16.msra.mxu0 %v97_v26  ;;  %v1979_v26 = vld [vmem:[%s3091_s1 + $0x144] ss:$16 sps:$4 sm:$0xff]  }
  0x39   :  { %1849 = vmatpush1.bf16.msra.mxu1 %v2392_v29  ;;  %912 = vmatprep.subr.bf16.mxu0 %v2115_v0 }
  0x3a   :  { %1834 = vmatprep.subr.bf16.mxu1 %v2115_v0 }
  0x3c   :  { %913 = vmatpush1.bf16.msra.mxu0 %v98_v34  ;;  %v1990_v34 = vld [vmem:[%s3091_s1 + $0x188] ss:$16 sps:$4 sm:$0xff]  }
  0x3d   :  { %1850 = vmatpush1.bf16.msra.mxu1 %v2409_v37  ;;  %914 = vmatprep.subr.bf16.mxu0 %v2115_v0 }
  0x3e   :  { %1835 = vmatprep.subr.bf16.mxu1 %v2115_v0 }
  0x40   :  { %915 = vmatpush1.bf16.msra.mxu0 %v99_v42  ;;  %v2001_v42 = vld [vmem:[%s3091_s1 + $0x1a0] ss:$16 sps:$4 sm:$0xff]  }
  0x41   :  { %1851 = vmatpush1.bf16.msra.mxu1 %v2426_v43  ;;  %1173 = vmatprep.subr.bf16.mxu0 %v2115_v0 }
  0x42   :  { %1804 = vmatprep.subr.bf16.mxu1 %v1534_v46 }
  0x43   :  { %917 = vmatmul.mubr.bf16.vlgmr.msra.gmra.mrb[0].mxu0 %v1919_v44  ;;  %v2003_v44 = vld [vmem:[%s3091_s1 + $0x1c4] ss:$16 sps:$4 sm:$0xff]  }
  0x44   :  { %1214 = vmatmul.mubr.bf16.vlgmr.msra.gmra.mrb[0].mxu1 %v1922_v47  ;;  %1174 = vmatpush1.bf16.msra.mxu0 %v2166_v8  ;;  %v1933_v8 = vld [vmem:[%s3091_s1 + $0x6c] ss:$16 sps:$4 sm:$0xff]   ;;  %v2007_v47 = vld [vmem:[%s3091_s1 + $0x1c0] ss:$16 sps:$4 sm:$0xff]  }
  0x45   :  { %1805 = vmatpush3.bf16.msra.mxu1 %v1534_v46  ;;  %924 = vmatprep.mubr.bf16.mxu0 %v1925_v50  ;;  %v2005_v46 = vld [vmem:[%s3091_s1 + $0x1ec] ss:$16 sps:$4 sm:$0xff]  }
  0x46   :  { %1221 = vmatprep.mubr.bf16.mxu1 %v1927_v52  ;;  %1175 = vmatprep.subr.bf16.mxu0 %v2115_v0  ;;  %v2011_v50 = vld [vmem:[%s3091_s1 + $0x20c] ss:$16 sps:$4 sm:$0xff]   ;;  %v2013_v52 = vld [vmem:[%s3091_s1 + $0x1e0] ss:$16 sps:$4 sm:$0xff]  }
  0x47   :  { %1806 = vmatprep.subr.bf16.mxu1 %v1535_v54 }
  0x48   :  { %1176 = vmatpush1.bf16.msra.mxu0 %v2176_v12  ;;  %v1937_v12 = vld [vmem:[%s3091_s1 + $0x64] ss:$16 sps:$4 sm:$0xff]  }
  0x49   :  { %1177 = vmatprep.subr.bf16.mxu0 %v2115_v0  ;;  %1807 = vmatpush3.bf16.msra.mxu1 %v1535_v54  ;;  %v2015_v54 = vld [vmem:[%s3091_s1 + $0x204] ss:$16 sps:$4 sm:$0xff]  }
  0x4a   :  { %1808 = vmatprep.subr.bf16.mxu1 %v1536_v59 }
  0x4b   :  { %925 = vmatmul.mubr.bf16.gmra.mrb[4].mxu0 %v1929_v56  ;;  %v2019_v56 = vld [vmem:[%s3091_s1 + $0x200] ss:$16 sps:$4 sm:$0xff]  }
  0x4c   :  { %1222 = vmatmul.mubr.bf16.gmra.mrb[4].mxu1 %v1930_v58  ;;  %932 = vmatprep.mubr.bf16.mxu0 %v1931_v60  ;;  %v2020_v58 = vld [vmem:[%s3091_s1 + $0x228] ss:$16 sps:$4 sm:$0xff]   ;;  %v2023_v60 = vld [vmem:[%s3091_s1 + $0x24c] ss:$16 sps:$4 sm:$0xff]  }
  0x4d   :  { %1229 = vmatprep.mubr.bf16.mxu1 %v1933_v8  ;;  %1178 = vmatpush1.bf16.msra.mxu0 %v2193_v18  ;;  %v1941_v18 = vld [vmem:[%s3091_s1 + $0x60] ss:$16 sps:$4 sm:$0xff]  }
  0x4e   :  { %1179 = vmatprep.subr.bf16.mxu0 %v2115_v0  ;;  %1809 = vmatpush3.bf16.msra.mxu1 %v1536_v59  ;;  %v2021_v59 = vld [vmem:[%s3091_s1 + $0x224] ss:$16 sps:$4 sm:$0xff]   ;;  %v2025_v8 = vld [vmem:[%s3091_s1 + $0x220] ss:$16 sps:$4 sm:$0xff]  }
  0x4f   :  { %1810 = vmatprep.subr.bf16.mxu1 %v1537_v19 }
  0x51   :  { %1180 = vmatpush1.bf16.msra.mxu0 %v2210_v24  ;;  %v1943_v24 = vld [vmem:[%s3091_s1 + $0x84] ss:$16 sps:$4 sm:$0xff]  }
  0x52   :  { %1181 = vmatprep.subr.bf16.mxu0 %v2115_v0  ;;  %1811 = vmatpush3.bf16.msra.mxu1 %v1537_v19  ;;  %v2065_v19 = vld [vmem:[%s3091_s1 + $0x32c] ss:$16 sps:$4 sm:$0xff]  }
  0x53   :  { %933 = vmatmul.mubr.bf16.gmra.mrb[8].mxu0 %v1935_v61  ;;  %v2026_v61 = vld [vmem:[%s3091_s1 + $0x248] ss:$16 sps:$4 sm:$0xff]  }
  0x54   :  { %1230 = vmatmul.mubr.bf16.gmra.mrb[8].mxu1 %v1936_v62  ;;  %940 = vmatprep.mubr.bf16.mxu0 %v1937_v12  ;;  %v2027_v62 = vld [vmem:[%s3091_s1 + $0x244] ss:$16 sps:$4 sm:$0xff]   ;;  %v2029_v12 = vld [vmem:[%s3091_s1 + $0x26c] ss:$16 sps:$4 sm:$0xff]  }
  0x55   :  { %1237 = vmatprep.mubr.bf16.mxu1 %v1939_v1  ;;  %1182 = vmatpush1.bf16.msra.mxu0 %v2227_v30  ;;  %v1947_v30 = vld [vmem:[%s3091_s1 + $0x80] ss:$16 sps:$4 sm:$0xff]  }
  0x56   :  { %1183 = vmatprep.subr.bf16.mxu0 %v2115_v0  ;;  %v2031_v1 = vld [vmem:[%s3091_s1 + $0x240] ss:$16 sps:$4 sm:$0xff]  }
  0x59   :  { %1184 = vmatpush1.bf16.msra.mxu0 %v2244_v36  ;;  %v1949_v36 = vld [vmem:[%s3091_s1 + $0xa4] ss:$16 sps:$4 sm:$0xff]  }
  0x5a   :  { %1185 = vmatprep.subr.bf16.mxu0 %v2115_v0 }
  0x5b   :  { %941 = vmatmul.mubr.bf16.gmra.mrb[12].mxu0 %v1941_v18  ;;  %v2032_v18 = vld [vmem:[%s3091_s1 + $0x268] ss:$16 sps:$4 sm:$0xff]  }
  0x5c   :  { %1238 = vmatmul.mubr.bf16.gmra.mrb[12].mxu1 %v1942_v2  ;;  %948 = vmatprep.mubr.bf16.mxu0 %v1943_v24  ;;  %v2033_v2 = vld [vmem:[%s3091_s1 + $0x264] ss:$16 sps:$4 sm:$0xff]   ;;  %v2035_v24 = vld [vmem:[%s3091_s1 + $0x28c] ss:$16 sps:$4 sm:$0xff]  }
  0x5d   :  { %1245 = vmatprep.mubr.bf16.mxu1 %v1945_v3  ;;  %1186 = vmatpush1.bf16.msra.mxu0 %v2270_v45  ;;  %v1953_v45 = vld [vmem:[%s3091_s1 + $0xa0] ss:$16 sps:$4 sm:$0xff]  }
  0x5e   :  { %1187 = vmatprep.subr.bf16.mxu0 %v2115_v0  ;;  %v2037_v3 = vld [vmem:[%s3091_s1 + $0x260] ss:$16 sps:$4 sm:$0xff]  }
  0x61   :  { %1188 = vmatpush1.bf16.msra.mxu0 %v2287_v51  ;;  %v1955_v51 = vld [vmem:[%s3091_s1 + $0xc4] ss:$16 sps:$4 sm:$0xff]  }
  0x62   :  { %1189 = vmatprep.subr.bf16.mxu0 %v2115_v0 }
  0x63   :  { %949 = vmatmul.mubr.bf16.gmra.mrb[16].mxu0 %v1947_v30  ;;  %v2038_v30 = vld [vmem:[%s3091_s1 + $0x288] ss:$16 sps:$4 sm:$0xff]  }
  0x64   :  { %1246 = vmatmul.mubr.bf16.gmra.mrb[16].mxu1 %v1948_v4  ;;  %956 = vmatprep.mubr.bf16.mxu0 %v1949_v36  ;;  %v2039_v4 = vld [vmem:[%s3091_s1 + $0x284] ss:$16 sps:$4 sm:$0xff]   ;;  %v2041_v36 = vld [vmem:[%s3091_s1 + $0x2ac] ss:$16 sps:$4 sm:$0xff]  }
  0x65   :  { %1253 = vmatprep.mubr.bf16.mxu1 %v1951_v5  ;;  %1190 = vmatpush1.bf16.msra.mxu0 %v2304_v57  ;;  %v1959_v57 = vld [vmem:[%s3091_s1 + $0xc0] ss:$16 sps:$4 sm:$0xff]  }
  0x66   :  { %1191 = vmatprep.subr.bf16.mxu0 %v2115_v0  ;;  %v2043_v5 = vld [vmem:[%s3091_s1 + $0x280] ss:$16 sps:$4 sm:$0xff]  }
  0x69   :  { %1192 = vmatpush1.bf16.msra.mxu0 %v2321_v63  ;;  %v1961_v63 = vld [vmem:[%s3091_s1 + $0xe4] ss:$16 sps:$4 sm:$0xff]  }
  0x6a   :  { %1193 = vmatprep.subr.bf16.mxu0 %v2115_v0 }
  0x6b   :  { %957 = vmatmul.mubr.bf16.gmra.mrb[20].mxu0 %v1953_v45  ;;  %v2044_v45 = vld [vmem:[%s3091_s1 + $0x2a8] ss:$16 sps:$4 sm:$0xff]  }
  0x6c   :  { %1254 = vmatmul.mubr.bf16.gmra.mrb[20].mxu1 %v1954_v7  ;;  %964 = vmatprep.mubr.bf16.mxu0 %v1955_v51  ;;  %v2045_v7 = vld [vmem:[%s3091_s1 + $0x2a4] ss:$16 sps:$4 sm:$0xff]   ;;  %v2047_v51 = vld [vmem:[%s3091_s1 + $0x2cc] ss:$16 sps:$4 sm:$0xff]  }
  0x6d   :  { %1261 = vmatprep.mubr.bf16.mxu1 %v1957_v9  ;;  %1194 = vmatpush1.bf16.msra.mxu0 %v2338_v6  ;;  %v1965_v6 = vld [vmem:[%s3091_s1 + $0xe0] ss:$16 sps:$4 sm:$0xff]  }
  0x6e   :  { %1195 = vmatprep.subr.bf16.mxu0 %v2115_v0  ;;  %v2049_v9 = vld [vmem:[%s3091_s1 + $0x2a0] ss:$16 sps:$4 sm:$0xff]  }
  0x71   :  { %1196 = vmatpush1.bf16.msra.mxu0 %v2358_v15  ;;  %v1969_v15 = vld [vmem:[%s3091_s1 + $0x12c] ss:$16 sps:$4 sm:$0xff]  }
  0x72   :  { %1197 = vmatprep.subr.bf16.mxu0 %v2115_v0 }
  0x73   :  { %965 = vmatmul.mubr.bf16.gmra.mrb[24].mxu0 %v1959_v57  ;;  %v2050_v57 = vld [vmem:[%s3091_s1 + $0x2c8] ss:$16 sps:$4 sm:$0xff]  }
  0x74   :  { %1262 = vmatmul.mubr.bf16.gmra.mrb[24].mxu1 %v1960_v10  ;;  %972 = vmatprep.mubr.bf16.mxu0 %v1961_v63  ;;  %v2051_v10 = vld [vmem:[%s3091_s1 + $0x2c4] ss:$16 sps:$4 sm:$0xff]   ;;  %v2053_v63 = vld [vmem:[%s3091_s1 + $0x2ec] ss:$16 sps:$4 sm:$0xff]  }
  0x75   :  { %1269 = vmatprep.mubr.bf16.mxu1 %v1963_v11  ;;  %1198 = vmatpush1.bf16.msra.mxu0 %v2372_v21  ;;  %v1972_v21 = vld [vmem:[%s3091_s1 + $0x128] ss:$16 sps:$4 sm:$0xff]   ;;  %v2055_v11 = vld [vmem:[%s3091_s1 + $0x2c0] ss:$16 sps:$4 sm:$0xff]  }
  0x76   :  { %1199 = vmatprep.subr.bf16.mxu0 %v2115_v0 }
  0x79   :  { %1200 = vmatpush1.bf16.msra.mxu0 %v2392_v29  ;;  %v1984_v29 = vld [vmem:[%s3091_s1 + $0x168] ss:$16 sps:$4 sm:$0xff]  }
  0x7a   :  { %1201 = vmatprep.subr.bf16.mxu0 %v2115_v0 }
  0x7b   :  { %973 = vmatmul.mubr.bf16.gmra.mrb[28].mxu0 %v1965_v6  ;;  %v2056_v6 = vld [vmem:[%s3091_s1 + $0x2e8] ss:$16 sps:$4 sm:$0xff]  }
  0x7c   :  { %1270 = vmatmul.mubr.bf16.gmra.mrb[28].mxu1 %v1966_v13  ;;  %980 = vmatprep.mubr.bf16.mxu0 %v1967_v14  ;;  %v2057_v13 = vld [vmem:[%s3091_s1 + $0x2e4] ss:$16 sps:$4 sm:$0xff]   ;;  %v2059_v14 = vld [vmem:[%s3091_s1 + $0x30c] ss:$16 sps:$4 sm:$0xff]  }
  0x7d   :  { %1277 = vmatprep.mubr.bf16.mxu1 %v1969_v15  ;;  %1202 = vmatpush1.bf16.msra.mxu0 %v2409_v37  ;;  %v1993_v37 = vld [vmem:[%s3091_s1 + $0x1ac] ss:$16 sps:$4 sm:$0xff]   ;;  %v2061_v15 = vld [vmem:[%s3091_s1 + $0x2e0] ss:$16 sps:$4 sm:$0xff]  }
  0x7e   :  { %1203 = vmatprep.subr.bf16.mxu0 %v2115_v0  ;;  %v1977_v0 = vld [vmem:[%s3091_s1 + $0x120] ss:$16 sps:$4 sm:$0xff]  }
  0x81   :  { %1204 = vmatpush1.bf16.msra.mxu0 %v2426_v43  ;;  %v2002_v43 = vld [vmem:[%s3091_s1 + $0x1c8] ss:$16 sps:$4 sm:$0xff]  }
  0x83   :  { %981 = vmatmul.mubr.bf16.gmra.mrb[32].mxu0 %v1971_v20  ;;  %v2067_v20 = vld [vmem:[%s3091_s1 + $0x300] ss:$16 sps:$4 sm:$0xff]  }
  0x84   :  { %1278 = vmatmul.mubr.bf16.gmra.mrb[32].mxu1 %v1972_v21  ;;  %988 = vmatprep.mubr.bf16.mxu0 %v1973_v22  ;;  %v2068_v21 = vld [vmem:[%s3091_s1 + $0x328] ss:$16 sps:$4 sm:$0xff]   ;;  %v2069_v22 = vld [vmem:[%s3091_s1 + $0x324] ss:$16 sps:$4 sm:$0xff]  }
  0x85   :  { %1285 = vmatprep.mubr.bf16.mxu1 %v1975_v23  ;;  %v2071_v23 = vld [vmem:[%s3091_s1 + $0x34c] ss:$16 sps:$4 sm:$0xff]  }
  0x8b   :  { %989 = vmatmul.mubr.bf16.gmra.mrb[36].mxu0 %v1977_v0  ;;  %v2073_v0 = vld [vmem:[%s3091_s1 + $0x320] ss:$16 sps:$4 sm:$0xff]  }
  0x8c   :  { %1286 = vmatmul.mubr.bf16.gmra.mrb[36].mxu1 %v1978_v25  ;;  %996 = vmatprep.mubr.bf16.mxu0 %v1979_v26  ;;  %v2074_v25 = vld [vmem:[%s3091_s1 + $0x348] ss:$16 sps:$4 sm:$0xff]   ;;  %v2075_v26 = vld [vmem:[%s3091_s1 + $0x344] ss:$16 sps:$4 sm:$0xff]  }
  0x8d   :  { %1293 = vmatprep.mubr.bf16.mxu1 %v1981_v27  ;;  %v2077_v27 = vld [vmem:[%s3091_s1 + $0x36c] ss:$16 sps:$4 sm:$0xff]  }
  0x93   :  { %997 = vmatmul.mubr.bf16.gmra.mrb[40].mxu0 %v1983_v28  ;;  %v2079_v28 = vld [vmem:[%s3091_s1 + $0x340] ss:$16 sps:$4 sm:$0xff]  }
  0x94   :  { %1294 = vmatmul.mubr.bf16.gmra.mrb[40].mxu1 %v1984_v29  ;;  %1004 = vmatprep.mubr.bf16.mxu0 %v1985_v31  ;;  %v2080_v29 = vld [vmem:[%s3091_s1 + $0x368] ss:$16 sps:$4 sm:$0xff]   ;;  %v2081_v31 = vld [vmem:[%s3091_s1 + $0x364] ss:$16 sps:$4 sm:$0xff]  }
  0x95   :  { %1301 = vmatprep.mubr.bf16.mxu1 %v1987_v32  ;;  %v2083_v32 = vld [vmem:[%s3091_s1 + $0x38c] ss:$16 sps:$4 sm:$0xff]  }
  0x9b   :  { %1005 = vmatmul.mubr.bf16.gmra.mrb[44].mxu0 %v1989_v33 }
  0x9c   :  { %1302 = vmatmul.mubr.bf16.gmra.mrb[44].mxu1 %v1990_v34  ;;  %1012 = vmatprep.mubr.bf16.mxu0 %v1991_v35  ;;  %v2085_v34 = vld [vmem:[%s3091_s1 + $0x360] ss:$16 sps:$4 sm:$0xff]  }
  0x9d   :  { %1309 = vmatprep.mubr.bf16.mxu1 %v1993_v37  ;;  %v2086_v37 = vld [vmem:[%s3091_s1 + $0x388] ss:$16 sps:$4 sm:$0xff]  }
  0xa3   :  { %1013 = vmatmul.mubr.bf16.gmra.mrb[48].mxu0 %v1995_v38  ;;  %v2087_v38 = vld [vmem:[%s3091_s1 + $0x384] ss:$16 sps:$4 sm:$0xff]  }
  0xa4   :  { %1310 = vmatmul.mubr.bf16.gmra.mrb[48].mxu1 %v1996_v39  ;;  %1020 = vmatprep.mubr.bf16.mxu0 %v1997_v40  ;;  %v2089_v40 = vld [vmem:[%s3091_s1 + $0x3ac] ss:$16 sps:$4 sm:$0xff]  }
  0xa5   :  { %1317 = vmatprep.mubr.bf16.mxu1 %v1999_v41 }
  0xab   :  { %1021 = vmatmul.mubr.bf16.gmra.mrb[52].mxu0 %v2001_v42 }
  0xac   :  { %1318 = vmatmul.mubr.bf16.gmra.mrb[52].mxu1 %v2002_v43  ;;  %1028 = vmatprep.mubr.bf16.mxu0 %v2003_v44 }
  0xad   :  { %1325 = vmatprep.mubr.bf16.mxu1 %v2005_v46 }
  0xb3   :  { %1029 = vmatmul.mubr.bf16.gmra.mrb[56].mxu0 %v2007_v47  ;;  %v2091_v47 = vld [vmem:[%s3091_s1 + $0x380] ss:$16 sps:$4 sm:$0xff]  }
  0xb4   :  { %1326 = vmatmul.mubr.bf16.gmra.mrb[56].mxu1 %v2008_v48  ;;  %1036 = vmatprep.mubr.bf16.mxu0 %v2009_v49 }
  0xb5   :  { %1333 = vmatprep.mubr.bf16.mxu1 %v2011_v50  ;;  %v2092_v50 = vld [vmem:[%s3091_s1 + $0x3a8] ss:$16 sps:$4 sm:$0xff]  }
  0xbb   :  { %1037 = vmatmul.mubr.bf16.gmra.mrb[60].mxu0 %v2013_v52  ;;  %v2093_v52 = vld [vmem:[%s3091_s1 + $0x3a4] ss:$16 sps:$4 sm:$0xff]  }
  0xbc   :  { %1334 = vmatmul.mubr.bf16.gmra.mrb[60].mxu1 %v2014_v53  ;;  %1044 = vmatprep.mubr.bf16.mxu0 %v2015_v54 }
  0xbd   :  { %1341 = vmatprep.mubr.bf16.mxu1 %v2017_v55 }
  0xc3   :  { %1045 = vmatmul.mubr.bf16.gmra.mrb[64].mxu0 %v2019_v56  ;;  %v2095_v56 = vld [vmem:[%s3091_s1 + $0x3cc] ss:$16 sps:$4 sm:$0xff]  }
  0xc4   :  { %1342 = vmatmul.mubr.bf16.gmra.mrb[64].mxu1 %v2020_v58  ;;  %1052 = vmatprep.mubr.bf16.mxu0 %v2021_v59 }
  0xc5   :  { %1349 = vmatprep.mubr.bf16.mxu1 %v2023_v60 }
  0xcb   :  { %1053 = vmatmul.mubr.bf16.gmra.mrb[68].mxu0 %v2025_v8 }
  0xcc   :  { %1350 = vmatmul.mubr.bf16.gmra.mrb[68].mxu1 %v2026_v61  ;;  %1060 = vmatprep.mubr.bf16.mxu0 %v2027_v62  ;;  %v2097_v62 = vld [vmem:[%s3091_s1 + $0x3a0] ss:$16 sps:$4 sm:$0xff]  }
  0xcd   :  { %1357 = vmatprep.mubr.bf16.mxu1 %v2029_v12 }
  0xd3   :  { %1061 = vmatmul.mubr.bf16.gmra.mrb[72].mxu0 %v2031_v1 }
  0xd4   :  { %1358 = vmatmul.mubr.bf16.gmra.mrb[72].mxu1 %v2032_v18  ;;  %1068 = vmatprep.mubr.bf16.mxu0 %v2033_v2  ;;  %v2098_v18 = vld [vmem:[%s3091_s1 + $0x3c8] ss:$16 sps:$4 sm:$0xff]   ;;  %v2099_v2 = vld [vmem:[%s3091_s1 + $0x3c4] ss:$16 sps:$4 sm:$0xff]  }
  0xd5   :  { %1365 = vmatprep.mubr.bf16.mxu1 %v2035_v24 }
  0xdb   :  { %1069 = vmatmul.mubr.bf16.gmra.mrb[76].mxu0 %v2037_v3 }
  0xdc   :  { %1366 = vmatmul.mubr.bf16.gmra.mrb[76].mxu1 %v2038_v30  ;;  %1076 = vmatprep.mubr.bf16.mxu0 %v2039_v4  ;;  %v2101_v4 = vld [vmem:[%s3091_s1 + $0x3ec] ss:$16 sps:$4 sm:$0xff]  }
  0xdd   :  { %1373 = vmatprep.mubr.bf16.mxu1 %v2041_v36 }
  0xe3   :  { %1077 = vmatmul.mubr.bf16.gmra.mrb[80].mxu0 %v2043_v5 }
  0xe4   :  { %1374 = vmatmul.mubr.bf16.gmra.mrb[80].mxu1 %v2044_v45  ;;  %1084 = vmatprep.mubr.bf16.mxu0 %v2045_v7 }
  0xe5   :  { %1381 = vmatprep.mubr.bf16.mxu1 %v2047_v51 }
  0xeb   :  { %1085 = vmatmul.mubr.bf16.gmra.mrb[84].mxu0 %v2049_v9  ;;  %v2103_v9 = vld [vmem:[%s3091_s1 + $0x3c0] ss:$16 sps:$4 sm:$0xff]  }
  0xec   :  { %1382 = vmatmul.mubr.bf16.gmra.mrb[84].mxu1 %v2050_v57  ;;  %1092 = vmatprep.mubr.bf16.mxu0 %v2051_v10 }
  0xed   :  { %1389 = vmatprep.mubr.bf16.mxu1 %v2053_v63  ;;  %v2104_v63 = vld [vmem:[%s3091_s1 + $0x3e8] ss:$16 sps:$4 sm:$0xff]  }
  0xf3   :  { %1093 = vmatmul.mubr.bf16.gmra.mrb[88].mxu0 %v2055_v11  ;;  %v2105_v11 = vld [vmem:[%s3091_s1 + $0x3e4] ss:$16 sps:$4 sm:$0xff]  }
  0xf4   :  { %1390 = vmatmul.mubr.bf16.gmra.mrb[88].mxu1 %v2056_v6  ;;  %1100 = vmatprep.mubr.bf16.mxu0 %v2057_v13 }
  0xf5   :  { %1397 = vmatprep.mubr.bf16.mxu1 %v2059_v14 }
  0xfb   :  { %1101 = vmatmul.mubr.bf16.gmra.mrb[92].mxu0 %v2061_v15  ;;  %v2107_v15 = vld [vmem:[%s3093_s3] sm:$0xff]  }
  0xfc   :  { %1398 = vmatmul.mubr.bf16.gmra.mrb[92].mxu1 %v2062_v16  ;;  %1108 = vmatprep.mubr.bf16.mxu0 %v2063_v17 }
  0xfd   :  { %1405 = vmatprep.mubr.bf16.mxu1 %v2065_v19 }
 0x103   :  { %1109 = vmatmul.mubr.bf16.gmra.mrb[96].mxu0 %v2067_v20 }
 0x104   :  { %1406 = vmatmul.mubr.bf16.gmra.mrb[96].mxu1 %v2068_v21  ;;  %1116 = vmatprep.mubr.bf16.mxu0 %v2069_v22  ;;  %v2108_v22 = vld [vmem:[%s3091_s1 + $0x3e0] ss:$16 sps:$4 sm:$0xff]  }
 0x105   :  { %1413 = vmatprep.mubr.bf16.mxu1 %v2071_v23 }
 0x10b   :  { %1117 = vmatmul.mubr.bf16.gmra.mrb[100].mxu0 %v2073_v0 }
 0x10c   :  { %1414 = vmatmul.mubr.bf16.gmra.mrb[100].mxu1 %v2074_v25  ;;  %1124 = vmatprep.mubr.bf16.mxu0 %v2075_v26  ;;  %v2109_v25 = vld [vmem:[%s3093_s3 + $0x8] sm:$0xff]  }
 0x10d   :  { %1421 = vmatprep.mubr.bf16.mxu1 %v2077_v27  ;;  %v2112_v26 = vld [vmem:[%s3091_s1 + $0xc] ss:$16 sps:$4 sm:$0xff]  }
 0x113   :  { %1125 = vmatmul.mubr.bf16.gmra.mrb[104].mxu0 %v2079_v28 }
 0x114   :  { %1422 = vmatmul.mubr.bf16.gmra.mrb[104].mxu1 %v2080_v29  ;;  %1132 = vmatprep.mubr.bf16.mxu0 %v2081_v31  ;;  %v2113_v31 = vld [vmem:[%s3093_s3 + $0x10] sm:$0xff]  }
 0x115   :  { %1429 = vmatprep.mubr.bf16.mxu1 %v2083_v32 }
 0x117   :  { %v1215_v33 = vpop.f32.mrb[0].mxu1 }
 0x118   :  { %v1217_v35 = vpop.f32.mrb[1].mxu1 }
 0x119   :  { %v1218_v39 = vpop.f32.mrb[2].mxu1 }
 0x11a   :  { %v1220_v41 = vpop.f32.mrb[3].mxu1 }
 0x11b   :  { %1133 = vmatmul.mubr.bf16.gmra.mrb[108].mxu0 %v2085_v34  ;;  %v2114_v41 = vld [vmem:[%s3093_s3 + $0x18] sm:$0xff]  }
 0x11c   :  { %1430 = vmatmul.mubr.bf16.gmra.mrb[108].mxu1 %v2086_v37  ;;  %1140 = vmatprep.mubr.bf16.mxu0 %v2087_v38  ;;  %v2110_v38 = vld [vmem:[%s3091_s1 + $0x8] ss:$16 sps:$4 sm:$0xff]  }
 0x11d   :  { %1437 = vmatprep.mubr.bf16.mxu1 %v2089_v40 }
 0x11e   :  { %v926_v42 = vpop.f32.mrb[4].mxu0 }
 0x11f   :  { %v1216_v43 = vadd.f32 %v1215_v33, %v926_v42  ;;  %v1223_v44 = vpop.f32.mrb[4].mxu1  ;;  %v928_v46 = vpop.f32.mrb[5].mxu0 }
 0x120   :  { %v1225_v48 = vpop.f32.mrb[5].mxu1  ;;  %v929_v49 = vpop.f32.mrb[6].mxu0 }
 0x121   :  { %1464 = vst [vmem:[%s3094_s4 + $0x10] sm:$0xff] %v1216_v43  ;;  %v1219_v53 = vadd.f32 %v1218_v39, %v929_v49  ;;  %v1226_v54 = vpop.f32.mrb[6].mxu1  ;;  %v931_v55 = vpop.f32.mrb[7].mxu0 }
 0x122   :  { %v1228_v58 = vpop.f32.mrb[7].mxu1 }
 0x123   :  { %1465 = vst [vmem:[%s3094_s4 + $0x18] sm:$0xff] %v1219_v53  ;;  %1141 = vmatmul.mubr.bf16.gmra.mrb[112].mxu0 %v2091_v47 }
 0x124   :  { %1438 = vmatmul.mubr.bf16.gmra.mrb[112].mxu1 %v2092_v50  ;;  %1148 = vmatprep.mubr.bf16.mxu0 %v2093_v52 }
 0x125   :  { %1445 = vmatprep.mubr.bf16.mxu1 %v2095_v56 }
 0x126   :  { %v934_v59 = vpop.f32.mrb[8].mxu0 }
 0x127   :  { %v1224_v60 = vadd.f32 %v1223_v44, %v934_v59  ;;  %v1231_v8 = vpop.f32.mrb[8].mxu1  ;;  %v936_v61 = vpop.f32.mrb[9].mxu0 }
 0x128   :  { %v1233_v12 = vpop.f32.mrb[9].mxu1  ;;  %v937_v1 = vpop.f32.mrb[10].mxu0 }
 0x129   :  { %1466 = vst [vmem:[%s3094_s4 + $0x20] sm:$0xff] %v1224_v60  ;;  %v1227_v24 = vadd.f32 %v1226_v54, %v937_v1  ;;  %v1234_v3 = vpop.f32.mrb[10].mxu1  ;;  %v939_v30 = vpop.f32.mrb[11].mxu0 }
 0x12a   :  { %v1236_v36 = vpop.f32.mrb[11].mxu1 }
 0x12b   :  { %1467 = vst [vmem:[%s3094_s4 + $0x28] sm:$0xff] %v1227_v24  ;;  %1149 = vmatmul.mubr.bf16.gmra.mrb[116].mxu0 %v2097_v62 }
 0x12c   :  { %1446 = vmatmul.mubr.bf16.gmra.mrb[116].mxu1 %v2098_v18  ;;  %1156 = vmatprep.mubr.bf16.mxu0 %v2099_v2 }
 0x12d   :  { %1453 = vmatprep.mubr.bf16.mxu1 %v2101_v4 }
 0x12e   :  { %v942_v5 = vpop.f32.mrb[12].mxu0 }
 0x12f   :  { %v1232_v45 = vadd.f32 %v1231_v8, %v942_v5  ;;  %v1239_v7 = vpop.f32.mrb[12].mxu1  ;;  %v944_v51 = vpop.f32.mrb[13].mxu0 }
 0x130   :  { %v1241_v57 = vpop.f32.mrb[13].mxu1  ;;  %v945_v10 = vpop.f32.mrb[14].mxu0 }
 0x131   :  { %1468 = vst [vmem:[%s3094_s4 + $0x30] sm:$0xff] %v1232_v45  ;;  %v1235_v6 = vadd.f32 %v1234_v3, %v945_v10  ;;  %v1242_v13 = vpop.f32.mrb[14].mxu1  ;;  %v947_v14 = vpop.f32.mrb[15].mxu0 }
 0x132   :  { %v1244_v16 = vpop.f32.mrb[15].mxu1 }
 0x133   :  { %1469 = vst [vmem:[%s3094_s4 + $0x38] sm:$0xff] %v1235_v6  ;;  %1157 = vmatmul.mubr.bf16.gmra.mrb[120].mxu0 %v2103_v9 }
 0x134   :  { %1454 = vmatmul.mubr.bf16.gmra.mrb[120].mxu1 %v2104_v63  ;;  %1164 = vmatprep.mubr.bf16.mxu0 %v2105_v11 }
 0x135   :  { %1812 = vmatprep.mubr.msk.bf16.mxu1 %vm1566_vm0, %v2107_v15 }
 0x136   :  { %v950_v17 = vpop.f32.mrb[16].mxu0 }
 0x137   :  { %v1240_v19 = vadd.f32 %v1239_v7, %v950_v17  ;;  %v1247_v20 = vpop.f32.mrb[16].mxu1  ;;  %v952_v21 = vpop.f32.mrb[17].mxu0 }
 0x138   :  { %v1249_v23 = vpop.f32.mrb[17].mxu1  ;;  %v953_v0 = vpop.f32.mrb[18].mxu0 }
 0x139   :  { %1470 = vst [vmem:[%s3094_s4 + $0x40] sm:$0xff] %v1240_v19  ;;  %v1243_v27 = vadd.f32 %v1242_v13, %v953_v0  ;;  %v1250_v28 = vpop.f32.mrb[18].mxu1  ;;  %v955_v29 = vpop.f32.mrb[19].mxu0 }
 0x13a   :  { %v1252_v32 = vpop.f32.mrb[19].mxu1 }
 0x13b   :  { %1471 = vst [vmem:[%s3094_s4 + $0x48] sm:$0xff] %v1243_v27  ;;  %1165 = vmatmul.mubr.bf16.gmra.mrb[124].mxu0 %v2108_v22 }
 0x13c   :  { %1813 = vmatmul.mubr.msk.bf16.vlgmr.msra.gmra.mrb[124].mxu1 %vm1566_vm0, %v2109_v25  ;;  %1205 = vmatprep.mubr.bf16.mxu0 %v2112_v26 }
 0x13d   :  { %1816 = vmatprep.mubr.msk.bf16.mxu1 %vm1566_vm0, %v2113_v31 }
 0x13e   :  { %v958_v33 = vpop.f32.mrb[20].mxu0 }
 0x13f   :  { %v1248_v34 = vadd.f32 %v1247_v20, %v958_v33  ;;  %v1255_v35 = vpop.f32.mrb[20].mxu1  ;;  %v960_v37 = vpop.f32.mrb[21].mxu0 }
 0x140   :  { %v1257_v39 = vpop.f32.mrb[21].mxu1  ;;  %v961_v40 = vpop.f32.mrb[22].mxu0 }
 0x141   :  { %1472 = vst [vmem:[%s3094_s4 + $0x50] sm:$0xff] %v1248_v34  ;;  %v1251_v42 = vadd.f32 %v1250_v28, %v961_v40  ;;  %v1258_v43 = vpop.f32.mrb[22].mxu1  ;;  %v963_v44 = vpop.f32.mrb[23].mxu0 }
 0x142   :  { %v1260_v46 = vpop.f32.mrb[23].mxu1 }
 0x143   :  { %1473 = vst [vmem:[%s3094_s4 + $0x58] sm:$0xff] %v1251_v42  ;;  %1206 = vmatmul.mubr.bf16.vlgmr.msra.gmra.mrb[0].mxu0 %v2110_v38 }
 0x144   :  { %1817 = vmatmul.mubr.msk.bf16.gmra.mrb[128].mxu1 %vm1566_vm0, %v2114_v41 }
 0x146   :  { %v966_v47 = vpop.f32.mrb[24].mxu0 }
 0x147   :  { %v1256_v48 = vadd.f32 %v1255_v35, %v966_v47  ;;  %v1263_v49 = vpop.f32.mrb[24].mxu1  ;;  %v968_v50 = vpop.f32.mrb[25].mxu0 }
 0x148   :  { %v1265_v52 = vpop.f32.mrb[25].mxu1  ;;  %v969_v53 = vpop.f32.mrb[26].mxu0 }
 0x149   :  { %1474 = vst [vmem:[%s3094_s4 + $0x60] sm:$0xff] %v1256_v48  ;;  %v1259_v54 = vadd.f32 %v1258_v43, %v969_v53  ;;  %v1266_v55 = vpop.f32.mrb[26].mxu1  ;;  %v971_v56 = vpop.f32.mrb[27].mxu0 }
 0x14a   :  { %v1268_v58 = vpop.f32.mrb[27].mxu1 }
 0x14b   :  { %1475 = vst [vmem:[%s3094_s4 + $0x68] sm:$0xff] %v1259_v54 }
 0x14e   :  { %v974_v59 = vpop.f32.mrb[28].mxu0 }
 0x14f   :  { %v1264_v60 = vadd.f32 %v1263_v49, %v974_v59  ;;  %v1271_v8 = vpop.f32.mrb[28].mxu1  ;;  %v976_v61 = vpop.f32.mrb[29].mxu0 }
 0x150   :  { %v1273_v62 = vpop.f32.mrb[29].mxu1  ;;  %v977_v12 = vpop.f32.mrb[30].mxu0 }
 0x151   :  { %1476 = vst [vmem:[%s3094_s4 + $0x70] sm:$0xff] %v1264_v60  ;;  %v1267_v1 = vadd.f32 %v1266_v55, %v977_v12  ;;  %v1274_v18 = vpop.f32.mrb[30].mxu1  ;;  %v979_v2 = vpop.f32.mrb[31].mxu0 }
 0x152   :  { %v1276_v24 = vpop.f32.mrb[31].mxu1 }
 0x153   :  { %1477 = vst [vmem:[%s3094_s4 + $0x78] sm:$0xff] %v1267_v1 }
 0x156   :  { %v982_v3 = vpop.f32.mrb[32].mxu0 }
 0x157   :  { %v1272_v30 = vadd.f32 %v1271_v8, %v982_v3  ;;  %v1279_v4 = vpop.f32.mrb[32].mxu1  ;;  %v984_v36 = vpop.f32.mrb[33].mxu0 }
 0x158   :  { %v1281_v5 = vpop.f32.mrb[33].mxu1  ;;  %v985_v45 = vpop.f32.mrb[34].mxu0 }
 0x159   :  { %1478 = vst [vmem:[%s3094_s4 + $0x80] sm:$0xff] %v1272_v30  ;;  %v1275_v7 = vadd.f32 %v1274_v18, %v985_v45  ;;  %v1282_v51 = vpop.f32.mrb[34].mxu1  ;;  %v987_v9 = vpop.f32.mrb[35].mxu0 }
 0x15a   :  { %v1284_v57 = vpop.f32.mrb[35].mxu1 }
 0x15b   :  { %1479 = vst [vmem:[%s3094_s4 + $0x88] sm:$0xff] %v1275_v7 }
 0x15e   :  { %v990_v10 = vpop.f32.mrb[36].mxu0 }
 0x15f   :  { %v1280_v63 = vadd.f32 %v1279_v4, %v990_v10  ;;  %v1287_v11 = vpop.f32.mrb[36].mxu1  ;;  %v992_v6 = vpop.f32.mrb[37].mxu0 }
 0x160   :  { %v1289_v13 = vpop.f32.mrb[37].mxu1  ;;  %v993_v14 = vpop.f32.mrb[38].mxu0 }
 0x161   :  { %1480 = vst [vmem:[%s3094_s4 + $0x90] sm:$0xff] %v1280_v63  ;;  %v1283_v15 = vadd.f32 %v1282_v51, %v993_v14  ;;  %v1290_v16 = vpop.f32.mrb[38].mxu1  ;;  %v995_v17 = vpop.f32.mrb[39].mxu0 }
 0x162   :  { %v1292_v19 = vpop.f32.mrb[39].mxu1 }
 0x163   :  { %1481 = vst [vmem:[%s3094_s4 + $0x98] sm:$0xff] %v1283_v15 }
 0x166   :  { %v998_v20 = vpop.f32.mrb[40].mxu0 }
 0x167   :  { %v1288_v21 = vadd.f32 %v1287_v11, %v998_v20  ;;  %v1295_v22 = vpop.f32.mrb[40].mxu1  ;;  %v1000_v23 = vpop.f32.mrb[41].mxu0 }
 0x168   :  { %v1297_v0 = vpop.f32.mrb[41].mxu1  ;;  %v1001_v25 = vpop.f32.mrb[42].mxu0 }
 0x169   :  { %1482 = vst [vmem:[%s3094_s4 + $0xa0] sm:$0xff] %v1288_v21  ;;  %v1291_v26 = vadd.f32 %v1290_v16, %v1001_v25  ;;  %v1298_v27 = vpop.f32.mrb[42].mxu1  ;;  %v1003_v28 = vpop.f32.mrb[43].mxu0 }
 0x16a   :  { %v1300_v29 = vpop.f32.mrb[43].mxu1 }
 0x16b   :  { %1483 = vst [vmem:[%s3094_s4 + $0xa8] sm:$0xff] %v1291_v26 }
 0x16e   :  { %v1006_v31 = vpop.f32.mrb[44].mxu0 }
 0x16f   :  { %v1296_v32 = vadd.f32 %v1295_v22, %v1006_v31  ;;  %v1303_v33 = vpop.f32.mrb[44].mxu1  ;;  %v1008_v34 = vpop.f32.mrb[45].mxu0 }
 0x170   :  { %v1305_v35 = vpop.f32.mrb[45].mxu1  ;;  %v1009_v37 = vpop.f32.mrb[46].mxu0 }
 0x171   :  { %1484 = vst [vmem:[%s3094_s4 + $0xb0] sm:$0xff] %v1296_v32  ;;  %v1299_v38 = vadd.f32 %v1298_v27, %v1009_v37  ;;  %v1306_v39 = vpop.f32.mrb[46].mxu1  ;;  %v1011_v40 = vpop.f32.mrb[47].mxu0 }
 0x172   :  { %v1308_v41 = vpop.f32.mrb[47].mxu1 }
 0x173   :  { %1485 = vst [vmem:[%s3094_s4 + $0xb8] sm:$0xff] %v1299_v38 }
 0x176   :  { %v1014_v42 = vpop.f32.mrb[48].mxu0 }
 0x177   :  { %v1304_v43 = vadd.f32 %v1303_v33, %v1014_v42  ;;  %v1311_v44 = vpop.f32.mrb[48].mxu1  ;;  %v1016_v46 = vpop.f32.mrb[49].mxu0 }
 0x178   :  { %v1313_v47 = vpop.f32.mrb[49].mxu1  ;;  %v1017_v48 = vpop.f32.mrb[50].mxu0 }
 0x179   :  { %1486 = vst [vmem:[%s3094_s4 + $0xc0] sm:$0xff] %v1304_v43  ;;  %v1307_v49 = vadd.f32 %v1306_v39, %v1017_v48  ;;  %v1314_v50 = vpop.f32.mrb[50].mxu1  ;;  %v1019_v52 = vpop.f32.mrb[51].mxu0 }
 0x17a   :  { %v1316_v53 = vpop.f32.mrb[51].mxu1 }
 0x17b   :  { %1487 = vst [vmem:[%s3094_s4 + $0xc8] sm:$0xff] %v1307_v49 }
 0x17e   :  { %v1022_v54 = vpop.f32.mrb[52].mxu0 }
 0x17f   :  { %v1312_v55 = vadd.f32 %v1311_v44, %v1022_v54  ;;  %v1319_v56 = vpop.f32.mrb[52].mxu1  ;;  %v1024_v58 = vpop.f32.mrb[53].mxu0 }
 0x180   :  { %v1321_v59 = vpop.f32.mrb[53].mxu1  ;;  %v1025_v60 = vpop.f32.mrb[54].mxu0 }
 0x181   :  { %1488 = vst [vmem:[%s3094_s4 + $0xd0] sm:$0xff] %v1312_v55  ;;  %v1315_v8 = vadd.f32 %v1314_v50, %v1025_v60  ;;  %v1322_v61 = vpop.f32.mrb[54].mxu1  ;;  %v1027_v62 = vpop.f32.mrb[55].mxu0 }
 0x182   :  { %v1324_v12 = vpop.f32.mrb[55].mxu1 }
 0x183   :  { %1489 = vst [vmem:[%s3094_s4 + $0xd8] sm:$0xff] %v1315_v8 }
 0x186   :  { %v1030_v1 = vpop.f32.mrb[56].mxu0 }
 0x187   :  { %v1320_v18 = vadd.f32 %v1319_v56, %v1030_v1  ;;  %v1327_v2 = vpop.f32.mrb[56].mxu1  ;;  %v1032_v24 = vpop.f32.mrb[57].mxu0 }
 0x188   :  { %v1329_v3 = vpop.f32.mrb[57].mxu1  ;;  %v1033_v30 = vpop.f32.mrb[58].mxu0 }
 0x189   :  { %1490 = vst [vmem:[%s3094_s4 + $0xe0] sm:$0xff] %v1320_v18  ;;  %v1323_v4 = vadd.f32 %v1322_v61, %v1033_v30  ;;  %v1330_v36 = vpop.f32.mrb[58].mxu1  ;;  %v1035_v5 = vpop.f32.mrb[59].mxu0 }
 0x18a   :  { %v1332_v45 = vpop.f32.mrb[59].mxu1 }
 0x18b   :  { %1491 = vst [vmem:[%s3094_s4 + $0xe8] sm:$0xff] %v1323_v4 }
 0x18e   :  { %v1038_v7 = vpop.f32.mrb[60].mxu0 }
 0x18f   :  { %v1328_v51 = vadd.f32 %v1327_v2, %v1038_v7  ;;  %v1335_v9 = vpop.f32.mrb[60].mxu1  ;;  %v1040_v57 = vpop.f32.mrb[61].mxu0 }
 0x190   :  { %v1337_v10 = vpop.f32.mrb[61].mxu1  ;;  %v1041_v63 = vpop.f32.mrb[62].mxu0 }
 0x191   :  { %1492 = vst [vmem:[%s3094_s4 + $0xf0] sm:$0xff] %v1328_v51  ;;  %v1331_v11 = vadd.f32 %v1330_v36, %v1041_v63  ;;  %v1338_v6 = vpop.f32.mrb[62].mxu1  ;;  %v1043_v13 = vpop.f32.mrb[63].mxu0 }
 0x192   :  { %v1340_v14 = vpop.f32.mrb[63].mxu1 }
 0x193   :  { %1493 = vst [vmem:[%s3094_s4 + $0xf8] sm:$0xff] %v1331_v11 }
 0x196   :  { %v1046_v15 = vpop.f32.mrb[64].mxu0 }
 0x197   :  { %v1336_v16 = vadd.f32 %v1335_v9, %v1046_v15  ;;  %v1343_v17 = vpop.f32.mrb[64].mxu1  ;;  %v1048_v19 = vpop.f32.mrb[65].mxu0 }
 0x198   :  { %v1345_v20 = vpop.f32.mrb[65].mxu1  ;;  %v1049_v21 = vpop.f32.mrb[66].mxu0 }
 0x199   :  { %1494 = vst [vmem:[%s3094_s4 + $0x100] sm:$0xff] %v1336_v16  ;;  %v1339_v22 = vadd.f32 %v1338_v6, %v1049_v21  ;;  %v1346_v23 = vpop.f32.mrb[66].mxu1  ;;  %v1051_v0 = vpop.f32.mrb[67].mxu0 }
 0x19a   :  { %v1348_v25 = vpop.f32.mrb[67].mxu1 }
 0x19b   :  { %1495 = vst [vmem:[%s3094_s4 + $0x108] sm:$0xff] %v1339_v22 }
 0x19e   :  { %v1054_v26 = vpop.f32.mrb[68].mxu0 }
 0x19f   :  { %v1344_v27 = vadd.f32 %v1343_v17, %v1054_v26  ;;  %v1351_v28 = vpop.f32.mrb[68].mxu1  ;;  %v1056_v29 = vpop.f32.mrb[69].mxu0 }
 0x1a0   :  { %v1353_v31 = vpop.f32.mrb[69].mxu1  ;;  %v1057_v32 = vpop.f32.mrb[70].mxu0 }
 0x1a1   :  { %1496 = vst [vmem:[%s3094_s4 + $0x110] sm:$0xff] %v1344_v27  ;;  %v1347_v33 = vadd.f32 %v1346_v23, %v1057_v32  ;;  %v1354_v34 = vpop.f32.mrb[70].mxu1  ;;  %v1059_v35 = vpop.f32.mrb[71].mxu0 }
 0x1a2   :  { %v1356_v37 = vpop.f32.mrb[71].mxu1 }
 0x1a3   :  { %1497 = vst [vmem:[%s3094_s4 + $0x118] sm:$0xff] %v1347_v33 }
 0x1a6   :  { %v1062_v38 = vpop.f32.mrb[72].mxu0 }
 0x1a7   :  { %v1352_v39 = vadd.f32 %v1351_v28, %v1062_v38  ;;  %v1359_v40 = vpop.f32.mrb[72].mxu1  ;;  %v1064_v41 = vpop.f32.mrb[73].mxu0 }
 0x1a8   :  { %v1361_v42 = vpop.f32.mrb[73].mxu1  ;;  %v1065_v43 = vpop.f32.mrb[74].mxu0 }
 0x1a9   :  { %1498 = vst [vmem:[%s3094_s4 + $0x120] sm:$0xff] %v1352_v39  ;;  %v1355_v44 = vadd.f32 %v1354_v34, %v1065_v43  ;;  %v1362_v46 = vpop.f32.mrb[74].mxu1  ;;  %v1067_v47 = vpop.f32.mrb[75].mxu0 }
 0x1aa   :  { %v1364_v48 = vpop.f32.mrb[75].mxu1 }
 0x1ab   :  { %1499 = vst [vmem:[%s3094_s4 + $0x128] sm:$0xff] %v1355_v44 }
 0x1ae   :  { %v1070_v49 = vpop.f32.mrb[76].mxu0 }
 0x1af   :  { %v1360_v50 = vadd.f32 %v1359_v40, %v1070_v49  ;;  %v1367_v52 = vpop.f32.mrb[76].mxu1  ;;  %v1072_v53 = vpop.f32.mrb[77].mxu0 }
 0x1b0   :  { %v1369_v54 = vpop.f32.mrb[77].mxu1  ;;  %v1073_v55 = vpop.f32.mrb[78].mxu0 }
 0x1b1   :  { %1500 = vst [vmem:[%s3094_s4 + $0x130] sm:$0xff] %v1360_v50  ;;  %v1363_v56 = vadd.f32 %v1362_v46, %v1073_v55  ;;  %v1370_v58 = vpop.f32.mrb[78].mxu1  ;;  %v1075_v59 = vpop.f32.mrb[79].mxu0 }
 0x1b2   :  { %v1372_v60 = vpop.f32.mrb[79].mxu1 }
 0x1b3   :  { %1501 = vst [vmem:[%s3094_s4 + $0x138] sm:$0xff] %v1363_v56 }
 0x1b6   :  { %v1078_v8 = vpop.f32.mrb[80].mxu0 }
 0x1b7   :  { %v1368_v61 = vadd.f32 %v1367_v52, %v1078_v8  ;;  %v1375_v62 = vpop.f32.mrb[80].mxu1  ;;  %v1080_v12 = vpop.f32.mrb[81].mxu0 }
 0x1b8   :  { %v1377_v1 = vpop.f32.mrb[81].mxu1  ;;  %v1081_v18 = vpop.f32.mrb[82].mxu0 }
 0x1b9   :  { %1502 = vst [vmem:[%s3094_s4 + $0x140] sm:$0xff] %v1368_v61  ;;  %v1371_v2 = vadd.f32 %v1370_v58, %v1081_v18  ;;  %v1378_v24 = vpop.f32.mrb[82].mxu1  ;;  %v1083_v3 = vpop.f32.mrb[83].mxu0 }
 0x1ba   :  { %v1380_v30 = vpop.f32.mrb[83].mxu1 }
 0x1bb   :  { %1503 = vst [vmem:[%s3094_s4 + $0x148] sm:$0xff] %v1371_v2 }
 0x1be   :  { %v1086_v4 = vpop.f32.mrb[84].mxu0 }
 0x1bf   :  { %v1376_v36 = vadd.f32 %v1375_v62, %v1086_v4  ;;  %v1383_v5 = vpop.f32.mrb[84].mxu1  ;;  %v1088_v45 = vpop.f32.mrb[85].mxu0 }
 0x1c0   :  { %v1385_v7 = vpop.f32.mrb[85].mxu1  ;;  %v1089_v51 = vpop.f32.mrb[86].mxu0 }
 0x1c1   :  { %1504 = vst [vmem:[%s3094_s4 + $0x150] sm:$0xff] %v1376_v36  ;;  %v1379_v9 = vadd.f32 %v1378_v24, %v1089_v51  ;;  %v1386_v57 = vpop.f32.mrb[86].mxu1  ;;  %v1091_v10 = vpop.f32.mrb[87].mxu0 }
 0x1c2   :  { %v1388_v63 = vpop.f32.mrb[87].mxu1 }
 0x1c3   :  { %1505 = vst [vmem:[%s3094_s4 + $0x158] sm:$0xff] %v1379_v9 }
 0x1c6   :  { %v1094_v11 = vpop.f32.mrb[88].mxu0 }
 0x1c7   :  { %v1384_v6 = vadd.f32 %v1383_v5, %v1094_v11  ;;  %v1391_v13 = vpop.f32.mrb[88].mxu1  ;;  %v1096_v14 = vpop.f32.mrb[89].mxu0 }
 0x1c8   :  { %v1393_v15 = vpop.f32.mrb[89].mxu1  ;;  %v1097_v16 = vpop.f32.mrb[90].mxu0 }
 0x1c9   :  { %1506 = vst [vmem:[%s3094_s4 + $0x160] sm:$0xff] %v1384_v6  ;;  %v1387_v17 = vadd.f32 %v1386_v57, %v1097_v16  ;;  %v1394_v19 = vpop.f32.mrb[90].mxu1  ;;  %v1099_v20 = vpop.f32.mrb[91].mxu0 }
 0x1ca   :  { %v1396_v21 = vpop.f32.mrb[91].mxu1 }
 0x1cb   :  { %1507 = vst [vmem:[%s3094_s4 + $0x168] sm:$0xff] %v1387_v17 }
 0x1ce   :  { %v1102_v22 = vpop.f32.mrb[92].mxu0 }
 0x1cf   :  { %v1392_v23 = vadd.f32 %v1391_v13, %v1102_v22  ;;  %v1399_v0 = vpop.f32.mrb[92].mxu1  ;;  %v1104_v25 = vpop.f32.mrb[93].mxu0 }
 0x1d0   :  { %v1401_v26 = vpop.f32.mrb[93].mxu1  ;;  %v1105_v27 = vpop.f32.mrb[94].mxu0 }
 0x1d1   :  { %1508 = vst [vmem:[%s3094_s4 + $0x170] sm:$0xff] %v1392_v23  ;;  %v1395_v28 = vadd.f32 %v1394_v19, %v1105_v27  ;;  %v1402_v29 = vpop.f32.mrb[94].mxu1  ;;  %v1107_v31 = vpop.f32.mrb[95].mxu0 }
 0x1d2   :  { %v1404_v32 = vpop.f32.mrb[95].mxu1 }
 0x1d3   :  { %1509 = vst [vmem:[%s3094_s4 + $0x178] sm:$0xff] %v1395_v28 }
 0x1d6   :  { %v1110_v33 = vpop.f32.mrb[96].mxu0 }
 0x1d7   :  { %v1400_v34 = vadd.f32 %v1399_v0, %v1110_v33  ;;  %v1407_v35 = vpop.f32.mrb[96].mxu1  ;;  %v1112_v37 = vpop.f32.mrb[97].mxu0 }
 0x1d8   :  { %v1409_v38 = vpop.f32.mrb[97].mxu1  ;;  %v1113_v39 = vpop.f32.mrb[98].mxu0 }
 0x1d9   :  { %1510 = vst [vmem:[%s3094_s4 + $0x180] sm:$0xff] %v1400_v34  ;;  %v1403_v40 = vadd.f32 %v1402_v29, %v1113_v39  ;;  %v1410_v41 = vpop.f32.mrb[98].mxu1  ;;  %v1115_v42 = vpop.f32.mrb[99].mxu0 }
 0x1da   :  { %v1412_v43 = vpop.f32.mrb[99].mxu1 }
 0x1db   :  { %1511 = vst [vmem:[%s3094_s4 + $0x188] sm:$0xff] %v1403_v40 }
 0x1de   :  { %v1118_v44 = vpop.f32.mrb[100].mxu0 }
 0x1df   :  { %v1408_v46 = vadd.f32 %v1407_v35, %v1118_v44  ;;  %v1415_v47 = vpop.f32.mrb[100].mxu1  ;;  %v1120_v48 = vpop.f32.mrb[101].mxu0 }
 0x1e0   :  { %v1417_v49 = vpop.f32.mrb[101].mxu1  ;;  %v1121_v50 = vpop.f32.mrb[102].mxu0 }
 0x1e1   :  { %1512 = vst [vmem:[%s3094_s4 + $0x190] sm:$0xff] %v1408_v46  ;;  %v1411_v52 = vadd.f32 %v1410_v41, %v1121_v50  ;;  %v1418_v53 = vpop.f32.mrb[102].mxu1  ;;  %v1123_v54 = vpop.f32.mrb[103].mxu0 }
 0x1e2   :  { %v1420_v55 = vpop.f32.mrb[103].mxu1 }
 0x1e3   :  { %1513 = vst [vmem:[%s3094_s4 + $0x198] sm:$0xff] %v1411_v52 }
 0x1e6   :  { %v1126_v56 = vpop.f32.mrb[104].mxu0 }
 0x1e7   :  { %v1416_v58 = vadd.f32 %v1415_v47, %v1126_v56  ;;  %v1423_v59 = vpop.f32.mrb[104].mxu1  ;;  %v1128_v60 = vpop.f32.mrb[105].mxu0 }
 0x1e8   :  { %v1425_v8 = vpop.f32.mrb[105].mxu1  ;;  %v1129_v61 = vpop.f32.mrb[106].mxu0 }
 0x1e9   :  { %1514 = vst [vmem:[%s3094_s4 + $0x1a0] sm:$0xff] %v1416_v58  ;;  %v1419_v62 = vadd.f32 %v1418_v53, %v1129_v61  ;;  %v1426_v12 = vpop.f32.mrb[106].mxu1  ;;  %v1131_v1 = vpop.f32.mrb[107].mxu0 }
 0x1ea   :  { %v1428_v18 = vpop.f32.mrb[107].mxu1 }
 0x1eb   :  { %1515 = vst [vmem:[%s3094_s4 + $0x1a8] sm:$0xff] %v1419_v62 }
 0x1ee   :  { %v1134_v2 = vpop.f32.mrb[108].mxu0 }
 0x1ef   :  { %v1424_v24 = vadd.f32 %v1423_v59, %v1134_v2  ;;  %v1431_v3 = vpop.f32.mrb[108].mxu1  ;;  %v1136_v30 = vpop.f32.mrb[109].mxu0 }
 0x1f0   :  { %v1433_v4 = vpop.f32.mrb[109].mxu1  ;;  %v1137_v36 = vpop.f32.mrb[110].mxu0 }
 0x1f1   :  { %1516 = vst [vmem:[%s3094_s4 + $0x1b0] sm:$0xff] %v1424_v24  ;;  %v1427_v5 = vadd.f32 %v1426_v12, %v1137_v36  ;;  %v1434_v45 = vpop.f32.mrb[110].mxu1  ;;  %v1139_v7 = vpop.f32.mrb[111].mxu0 }
 0x1f2   :  { %v1436_v51 = vpop.f32.mrb[111].mxu1 }
 0x1f3   :  { %1517 = vst [vmem:[%s3094_s4 + $0x1b8] sm:$0xff] %v1427_v5 }
 0x1f6   :  { %v1142_v9 = vpop.f32.mrb[112].mxu0 }
 0x1f7   :  { %v1432_v57 = vadd.f32 %v1431_v3, %v1142_v9  ;;  %v1439_v10 = vpop.f32.mrb[112].mxu1  ;;  %v1144_v63 = vpop.f32.mrb[113].mxu0 }
 0x1f8   :  { %v1441_v11 = vpop.f32.mrb[113].mxu1  ;;  %v1145_v6 = vpop.f32.mrb[114].mxu0 }
 0x1f9   :  { %1518 = vst [vmem:[%s3094_s4 + $0x1c0] sm:$0xff] %v1432_v57  ;;  %v1435_v13 = vadd.f32 %v1434_v45, %v1145_v6  ;;  %v1442_v14 = vpop.f32.mrb[114].mxu1  ;;  %v1147_v15 = vpop.f32.mrb[115].mxu0 }
 0x1fa   :  { %v1444_v16 = vpop.f32.mrb[115].mxu1 }
 0x1fb   :  { %1519 = vst [vmem:[%s3094_s4 + $0x1c8] sm:$0xff] %v1435_v13 }
 0x1fe   :  { %v1150_v17 = vpop.f32.mrb[116].mxu0 }
 0x1ff   :  { %v1440_v19 = vadd.f32 %v1439_v10, %v1150_v17  ;;  %v1447_v20 = vpop.f32.mrb[116].mxu1  ;;  %v1152_v21 = vpop.f32.mrb[117].mxu0 }
 0x200   :  { %v1449_v22 = vpop.f32.mrb[117].mxu1  ;;  %v1153_v23 = vpop.f32.mrb[118].mxu0 }
 0x201   :  { %1520 = vst [vmem:[%s3094_s4 + $0x1d0] sm:$0xff] %v1440_v19  ;;  %v1443_v0 = vadd.f32 %v1442_v14, %v1153_v23  ;;  %v1450_v25 = vpop.f32.mrb[118].mxu1  ;;  %v1155_v26 = vpop.f32.mrb[119].mxu0 }
 0x202   :  { %v1452_v27 = vpop.f32.mrb[119].mxu1 }
 0x203   :  { %1521 = vst [vmem:[%s3094_s4 + $0x1d8] sm:$0xff] %v1443_v0 }
 0x206   :  { %v1158_v28 = vpop.f32.mrb[120].mxu0 }
 0x207   :  { %v1448_v29 = vadd.f32 %v1447_v20, %v1158_v28  ;;  %v1455_v31 = vpop.f32.mrb[120].mxu1  ;;  %v1160_v32 = vpop.f32.mrb[121].mxu0 }
 0x208   :  { %v1457_v33 = vpop.f32.mrb[121].mxu1  ;;  %v1161_v34 = vpop.f32.mrb[122].mxu0 }
 0x209   :  { %1522 = vst [vmem:[%s3094_s4 + $0x1e0] sm:$0xff] %v1448_v29  ;;  %v1451_v35 = vadd.f32 %v1450_v25, %v1161_v34  ;;  %v1458_v37 = vpop.f32.mrb[122].mxu1  ;;  %v1163_v38 = vpop.f32.mrb[123].mxu0 }
 0x20a   :  { %v1460_v39 = vpop.f32.mrb[123].mxu1 }
 0x20b   :  { %1523 = vst [vmem:[%s3094_s4 + $0x1e8] sm:$0xff] %v1451_v35 }
 0x20e   :  { %v1166_v40 = vpop.f32.mrb[124].mxu0 }
 0x20f   :  { %v1456_v41 = vadd.f32 %v1455_v31, %v1166_v40  ;;  %v1814_v42 = vpop.f32.mrb[124].mxu1  ;;  %v1168_v43 = vpop.f32.mrb[125].mxu0 }
 0x210   :  { %1646 = vst [vmem:[%s3095_s5 + $0x10] sm:$0xff] %v1814_v42  ;;  %v1613_v44 = vpop.f32.mrb[125].mxu1  ;;  %v1169_v46 = vpop.f32.mrb[126].mxu0 }
 0x211   :  { %1524 = vst [vmem:[%s3094_s4 + $0x1f0] sm:$0xff] %v1456_v41  ;;  %1644 = vst [vmem:[%s3095_s5] sm:$0xff] %v1613_v44  ;;  %v1459_v47 = vadd.f32 %v1458_v37, %v1169_v46  ;;  %v1815_v48 = vpop.f32.mrb[126].mxu1  ;;  %v1171_v49 = vpop.f32.mrb[127].mxu0 }
 0x212   :  { %1647 = vst [vmem:[%s3095_s5 + $0x18] sm:$0xff] %v1815_v48  ;;  %v1616_v50 = vpop.f32.mrb[127].mxu1 }
 0x213   :  { %1525 = vst [vmem:[%s3094_s4 + $0x1f8] sm:$0xff] %v1459_v47  ;;  %1645 = vst [vmem:[%s3095_s5 + $0x8] sm:$0xff] %v1616_v50 }
 0x216   :  { %v1207_v52 = vpop.f32.mrb[0].mxu0 }
 0x217   :  { %1462 = vst [vmem:[%s3094_s4] sm:$0xff] %v1207_v52  ;;  %v1818_v53 = vpop.f32.mrb[128].mxu1  ;;  %v1209_v54 = vpop.f32.mrb[1].mxu0 }
 0x218   :  { %1650 = vst [vmem:[%s3095_s5 + $0x30] sm:$0xff] %v1818_v53  ;;  %v1629_v55 = vpop.f32.mrb[129].mxu1  ;;  %v1210_v56 = vpop.f32.mrb[2].mxu0 }
 0x219   :  { %1648 = vst [vmem:[%s3095_s5 + $0x20] sm:$0xff] %v1629_v55  ;;  %1463 = vst [vmem:[%s3094_s4 + $0x8] sm:$0xff] %v1210_v56  ;;  %v1819_v58 = vpop.f32.mrb[130].mxu1  ;;  %v1212_v59 = vpop.f32.mrb[3].mxu0 }
 0x21a   :  { %1651 = vst [vmem:[%s3095_s5 + $0x38] sm:$0xff] %v1819_v58  ;;  %v1632_v60 = vpop.f32.mrb[131].mxu1 }
 0x21b   :  { %1649 = vst [vmem:[%s3095_s5 + $0x28] sm:$0xff] %v1632_v60 }

</bundles_post_ra>
